<compile_context>
chip_gen: v6e
topology: v6e:2x2x1
jax: 0.10.0
libtpu: 0.0.40
codegen_flags: <defaults>
</compile_context>

<pallas_src>
import functools

import jax
import jax.numpy as jnp
from jax.experimental import pallas as pl
from jax.experimental.pallas import tpu as pltpu

LANE = 128  # vreg lane width; hidden/output feature dims are padded to multiples of it


def _round_up(x, m):
    return (x + m - 1) // m * m


def _sigmoid(z):
    # One EUP transcendental (tanh) instead of exp + reciprocal.
    return 0.5 * jnp.tanh(0.5 * z) + 0.5


def _discriminator_kernel(x_ref, w1_ref, b1_ref, w2_ref, b2_ref, w3_ref, b3_ref,
                          o_ref):
    # Layer 1: x arrives f32 (TILE_B, in_size); bf16 cast is free VPU work here.
    x = x_ref[...].astype(jnp.bfloat16)
    h = jnp.dot(x, w1_ref[...], preferred_element_type=jnp.float32)
    h = _sigmoid(h + b1_ref[...])
    # Layer 2 (K = HID_PAD, multiple of 128 -> full MXU tiles)
    h = jnp.dot(h.astype(jnp.bfloat16), w2_ref[...],
                preferred_element_type=jnp.float32)
    h = _sigmoid(h + b2_ref[...])
    # Layer 3: lane-dense bf16 output slab; padded out-columns sliced off outside.
    h = jnp.dot(h.astype(jnp.bfloat16), w3_ref[...],
                preferred_element_type=jnp.float32)
    o_ref[...] = _sigmoid(h + b3_ref[...]).astype(o_ref.dtype)


def _pad2d(a, rows, cols):
    return jnp.pad(a, ((0, rows - a.shape[0]), (0, cols - a.shape[1])))


@functools.partial(jax.jit, static_argnames=("out_size",))
def discriminator_forward(x, params, out_size):
    """x: (B, input_size) f32.  params: (in,out)-shaped weights, (1,out) biases (f32)."""
    B, in_size = x.shape
    hid = params["w1"].shape[1]
    assert params["w2"].shape == (hid, hid)
    assert params["w3"].shape[0] == hid and params["w3"].shape[1] == out_size

    HID_PAD = _round_up(hid, LANE)
    OUT_PAD = _round_up(out_size, LANE)

    # Weights stay VMEM-resident for the whole grid; guard that they actually fit.
    assert 2 * (in_size * HID_PAD + HID_PAD * HID_PAD + HID_PAD * OUT_PAD) <= 16 << 20, (
        "weights too large to keep VMEM-resident; this kernel needs K/N tiling")

    # --- batch tiling --------------------------------------------------------
    if B <= 512:
        # Single grid step: blocks equal the full array dims -> no (8,128)
        # divisibility constraint and no row padding at all.
        TILE_B, B_pad = B, B
    else:
        # >= 2 steps so v7x megacore shards the batch; cap at 2048 rows so the
        # per-step overhead is well amortized (v5e).  16-aligned -> bf16 output
        # tiles are sublane-dense.
        TILE_B = min(2048, _round_up(-(-B // 2), 16))
        B_pad = _round_up(B, TILE_B)

    # x is NOT cast/lane-padded in the wrapper (that was an extra full HBM pass);
    # only pad rows when the batch does not divide the tile.
    x_in = x if B_pad == B else jnp.pad(x, ((0, B_pad - B), (0, 0)))

    # Weight/bias padding + bf16 casts: tiny, one-time cost (independent of B).
    w1 = _pad2d(params["w1"], in_size, HID_PAD).astype(jnp.bfloat16)
    w2 = _pad2d(params["w2"], HID_PAD, HID_PAD).astype(jnp.bfloat16)
    w3 = _pad2d(params["w3"], HID_PAD, OUT_PAD).astype(jnp.bfloat16)
    b1 = _pad2d(params["b1"], 1, HID_PAD)  # biases stay f32
    b2 = _pad2d(params["b2"], 1, HID_PAD)
    b3 = _pad2d(params["b3"], 1, OUT_PAD)

    grid = (B_pad // TILE_B,)
    resident = lambda shape: pl.BlockSpec(shape, lambda i: (0, 0))  # DMA'd once

    cost = pl.CostEstimate(
        flops=2 * B_pad * (in_size * HID_PAD + HID_PAD * HID_PAD + HID_PAD * OUT_PAD),
        transcendentals=B_pad * (2 * HID_PAD + OUT_PAD),
        bytes_accessed=(B_pad * in_size * 4            # x read (f32)
                        + B_pad * OUT_PAD * 2          # out write (bf16)
                        + (w1.size + w2.size + w3.size) * 2
                        + (b1.size + b2.size + b3.size) * 4),
    )

    out_padded = pl.pallas_call(
        _discriminator_kernel,
        out_shape=jax.ShapeDtypeStruct((B_pad, OUT_PAD), jnp.bfloat16),
        grid_spec=pltpu.PrefetchScalarGridSpec(
            num_scalar_prefetch=0,
            grid=grid,
            in_specs=[
                pl.BlockSpec((TILE_B, in_size), lambda i: (i, 0)),  # x, pipelined
                resident((in_size, HID_PAD)),   # w1
                resident((1, HID_PAD)),         # b1
                resident((HID_PAD, HID_PAD)),   # w2
                resident((1, HID_PAD)),         # b2
                resident((HID_PAD, OUT_PAD)),   # w3
                resident((1, OUT_PAD)),         # b3
            ],
            out_specs=pl.BlockSpec((TILE_B, OUT_PAD), lambda i: (i, 0)),
        ),
        compiler_params=pltpu.CompilerParams(
            dimension_semantics=("parallel",),   # megacore-shard batch on v7x
        ),
        cost_estimate=cost,
    )(x_in, w1, b1, w2, b2, w3, b3)

    # Lane-dense bf16 slab -> logical (B, out_size) f32 (tiny slice + cast).
    return out_padded[:B, :out_size].astype(jnp.float32)


def init_params(key, input_size, hidden_size, output_size):
    """Deterministic synthetic parameters (PyTorch Linear init, stored as W.T)."""
    k1, k2, k3, k4, k5, k6 = jax.random.split(key, 6)
    s1 = 1.0 / jnp.sqrt(input_size)
    s2 = 1.0 / jnp.sqrt(hidden_size)
    return {
        "w1": jax.random.uniform(k1, (input_size, hidden_size), jnp.float32, -s1, s1),
        "b1": jax.random.uniform(k2, (1, hidden_size), jnp.float32, -s1, s1),
        "w2": jax.random.uniform(k3, (hidden_size, hidden_size), jnp.float32, -s2, s2),
        "b2": jax.random.uniform(k4, (1, hidden_size), jnp.float32, -s2, s2),
        "w3": jax.random.uniform(k5, (hidden_size, output_size), jnp.float32, -s2, s2),
        "b3": jax.random.uniform(k6, (1, output_size), jnp.float32, -s2, s2),
    }


def _reference_forward(x, p):
    h = jax.nn.sigmoid(x @ p["w1"] + p["b1"])
    h = jax.nn.sigmoid(h @ p["w2"] + p["b2"])
    return jax.nn.sigmoid(h @ p["w3"] + p["b3"])


if __name__ == "__main__":
    # Small shapes consistent with the module's forward: (batch, input_size)
    batch, input_size, hidden_size, output_size = 8, 32, 64, 1

    key = jax.random.PRNGKey(0)
    kx, kp = jax.random.split(key)
    x = jax.random.normal(kx, (batch, input_size), jnp.float32)
    params = init_params(kp, input_size, hidden_size, output_size)

    out = discriminator_forward(x, params, output_size)
    out = jax.block_until_ready(out)

    ref = _reference_forward(x, params)
    assert out.shape == (batch, output_size)
    # Accuracy contract: bf16 matmul operands + bf16 output slab vs. f32 reference.
    assert jnp.allclose(out, ref, atol=2e-2, rtol=2e-2), (
        f"max abs err {jnp.max(jnp.abs(out - ref))}")

    print("KERNEL_OK")
</pallas_src>

<mosaic_0001>
module attributes {stable_mosaic.version = 11 : i64} {
  func.func @_discriminator_kernel(%arg0: i32, %arg1: memref<8x32xf32, #tpu.memory_space<vmem>>, %arg2: memref<32x128xbf16, #tpu.memory_space<vmem>>, %arg3: memref<1x128xf32, #tpu.memory_space<vmem>>, %arg4: memref<128x128xbf16, #tpu.memory_space<vmem>>, %arg5: memref<1x128xf32, #tpu.memory_space<vmem>>, %arg6: memref<128x128xbf16, #tpu.memory_space<vmem>>, %arg7: memref<1x128xf32, #tpu.memory_space<vmem>>, %arg8: memref<8x128xbf16, #tpu.memory_space<vmem>>) attributes {dimension_semantics = [#tpu.dimension_semantics<parallel>], iteration_bounds = array<i64: 1>, scalar_prefetch = 0 : i64, scratch_operands = 0 : i64, tpu.core_type = #tpu.core_type<tc>, window_params = [{transform_indices = @transform_0, window_bounds = array<i64: 8, 32>}, {pipeline_mode = #tpu.pipeline_mode<synchronous>, transform_indices = @transform_1, window_bounds = array<i64: 32, 128>}, {pipeline_mode = #tpu.pipeline_mode<synchronous>, transform_indices = @transform_2, window_bounds = array<i64: 1, 128>}, {pipeline_mode = #tpu.pipeline_mode<synchronous>, transform_indices = @transform_3, window_bounds = array<i64: 128, 128>}, {pipeline_mode = #tpu.pipeline_mode<synchronous>, transform_indices = @transform_4, window_bounds = array<i64: 1, 128>}, {pipeline_mode = #tpu.pipeline_mode<synchronous>, transform_indices = @transform_5, window_bounds = array<i64: 128, 128>}, {pipeline_mode = #tpu.pipeline_mode<synchronous>, transform_indices = @transform_6, window_bounds = array<i64: 1, 128>}, {transform_indices = @transform_7, window_bounds = array<i64: 8, 128>}]} {
    %c0 = arith.constant 0 : index
    %c0_0 = arith.constant 0 : index
    %0 = vector.load %arg1[%c0, %c0_0] : memref<8x32xf32, #tpu.memory_space<vmem>>, vector<8x32xf32>
    %1 = arith.truncf %0 : vector<8x32xf32> to vector<8x32xbf16>
    %c0_1 = arith.constant 0 : index
    %c0_2 = arith.constant 0 : index
    %2 = vector.load %arg2[%c0_1, %c0_2] : memref<32x128xbf16, #tpu.memory_space<vmem>>, vector<32x128xbf16>
    %cst = arith.constant dense<0.000000e+00> : vector<8x128xf32>
    %3 = tpu.matmul %1, %2, %cst {dimension_numbers = #tpu.dot_dimension_numbers<[1], [0], [0], [1], [0, 0, 1, 1], [], []>} : vector<8x32xbf16>, vector<32x128xbf16>, vector<8x128xf32> -> vector<8x128xf32>
    %c0_3 = arith.constant 0 : index
    %c0_4 = arith.constant 0 : index
    %4 = vector.load %arg3[%c0_3, %c0_4] : memref<1x128xf32, #tpu.memory_space<vmem>>, vector<1x128xf32>
    %5 = vector.broadcast %4 : vector<1x128xf32> to vector<8x128xf32>
    %6 = arith.addf %3, %5 : vector<8x128xf32>
    %cst_5 = arith.constant 5.000000e-01 : f32
    %7 = vector.broadcast %cst_5 : f32 to vector<8x128xf32>
    %8 = arith.mulf %7, %6 : vector<8x128xf32>
    %9 = math.tanh %8 : vector<8x128xf32>
    %cst_6 = arith.constant 5.000000e-01 : f32
    %10 = vector.broadcast %cst_6 : f32 to vector<8x128xf32>
    %11 = arith.mulf %10, %9 : vector<8x128xf32>
    %cst_7 = arith.constant 5.000000e-01 : f32
    %12 = vector.broadcast %cst_7 : f32 to vector<8x128xf32>
    %13 = arith.addf %11, %12 : vector<8x128xf32>
    %14 = arith.truncf %13 : vector<8x128xf32> to vector<8x128xbf16>
    %c0_8 = arith.constant 0 : index
    %c0_9 = arith.constant 0 : index
    %15 = vector.load %arg4[%c0_8, %c0_9] : memref<128x128xbf16, #tpu.memory_space<vmem>>, vector<128x128xbf16>
    %cst_10 = arith.constant dense<0.000000e+00> : vector<8x128xf32>
    %16 = tpu.matmul %14, %15, %cst_10 {dimension_numbers = #tpu.dot_dimension_numbers<[1], [0], [0], [1], [0, 0, 1, 1], [], []>} : vector<8x128xbf16>, vector<128x128xbf16>, vector<8x128xf32> -> vector<8x128xf32>
    %c0_11 = arith.constant 0 : index
    %c0_12 = arith.constant 0 : index
    %17 = vector.load %arg5[%c0_11, %c0_12] : memref<1x128xf32, #tpu.memory_space<vmem>>, vector<1x128xf32>
    %18 = vector.broadcast %17 : vector<1x128xf32> to vector<8x128xf32>
    %19 = arith.addf %16, %18 : vector<8x128xf32>
    %cst_13 = arith.constant 5.000000e-01 : f32
    %20 = vector.broadcast %cst_13 : f32 to vector<8x128xf32>
    %21 = arith.mulf %20, %19 : vector<8x128xf32>
    %22 = math.tanh %21 : vector<8x128xf32>
    %cst_14 = arith.constant 5.000000e-01 : f32
    %23 = vector.broadcast %cst_14 : f32 to vector<8x128xf32>
    %24 = arith.mulf %23, %22 : vector<8x128xf32>
    %cst_15 = arith.constant 5.000000e-01 : f32
    %25 = vector.broadcast %cst_15 : f32 to vector<8x128xf32>
    %26 = arith.addf %24, %25 : vector<8x128xf32>
    %27 = arith.truncf %26 : vector<8x128xf32> to vector<8x128xbf16>
    %c0_16 = arith.constant 0 : index
    %c0_17 = arith.constant 0 : index
    %28 = vector.load %arg6[%c0_16, %c0_17] : memref<128x128xbf16, #tpu.memory_space<vmem>>, vector<128x128xbf16>
    %cst_18 = arith.constant dense<0.000000e+00> : vector<8x128xf32>
    %29 = tpu.matmul %27, %28, %cst_18 {dimension_numbers = #tpu.dot_dimension_numbers<[1], [0], [0], [1], [0, 0, 1, 1], [], []>} : vector<8x128xbf16>, vector<128x128xbf16>, vector<8x128xf32> -> vector<8x128xf32>
    %c0_19 = arith.constant 0 : index
    %c0_20 = arith.constant 0 : index
    %30 = vector.load %arg7[%c0_19, %c0_20] : memref<1x128xf32, #tpu.memory_space<vmem>>, vector<1x128xf32>
    %31 = vector.broadcast %30 : vector<1x128xf32> to vector<8x128xf32>
    %32 = arith.addf %29, %31 : vector<8x128xf32>
    %cst_21 = arith.constant 5.000000e-01 : f32
    %33 = vector.broadcast %cst_21 : f32 to vector<8x128xf32>
    %34 = arith.mulf %33, %32 : vector<8x128xf32>
    %35 = math.tanh %34 : vector<8x128xf32>
    %cst_22 = arith.constant 5.000000e-01 : f32
    %36 = vector.broadcast %cst_22 : f32 to vector<8x128xf32>
    %37 = arith.mulf %36, %35 : vector<8x128xf32>
    %cst_23 = arith.constant 5.000000e-01 : f32
    %38 = vector.broadcast %cst_23 : f32 to vector<8x128xf32>
    %39 = arith.addf %37, %38 : vector<8x128xf32>
    %40 = arith.truncf %39 : vector<8x128xf32> to vector<8x128xbf16>
    %c0_24 = arith.constant 0 : index
    %c0_25 = arith.constant 0 : index
    %41 = vector.load %arg8[%c0_24, %c0_25] : memref<8x128xbf16, #tpu.memory_space<vmem>>, vector<8x128xbf16>
    tpu.vector_store %arg8[%c0_24, %c0_25], %40 {strides = array<i32>} : memref<8x128xbf16, #tpu.memory_space<vmem>>, vector<8x128xbf16>,
    return
  }
  func.func @transform_0(%arg0: i32) -> (i32, i32) {
    %c0_i32 = arith.constant 0 : i32
    %c0_i32_0 = arith.constant 0 : i32
    return %arg0, %c0_i32 : i32, i32
  }
  func.func @transform_1(%arg0: i32) -> (i32, i32) {
    %c0_i32 = arith.constant 0 : i32
    %c0_i32_0 = arith.constant 0 : i32
    %c0_i32_1 = arith.constant 0 : i32
    return %c0_i32, %c0_i32_0 : i32, i32
  }
  func.func @transform_2(%arg0: i32) -> (i32, i32) {
    %c0_i32 = arith.constant 0 : i32
    %c0_i32_0 = arith.constant 0 : i32
    %c0_i32_1 = arith.constant 0 : i32
    return %c0_i32, %c0_i32_0 : i32, i32
  }
  func.func @transform_3(%arg0: i32) -> (i32, i32) {
    %c0_i32 = arith.constant 0 : i32
    %c0_i32_0 = arith.constant 0 : i32
    %c0_i32_1 = arith.constant 0 : i32
    return %c0_i32, %c0_i32_0 : i32, i32
  }
  func.func @transform_4(%arg0: i32) -> (i32, i32) {
    %c0_i32 = arith.constant 0 : i32
    %c0_i32_0 = arith.constant 0 : i32
    %c0_i32_1 = arith.constant 0 : i32
    return %c0_i32, %c0_i32_0 : i32, i32
  }
  func.func @transform_5(%arg0: i32) -> (i32, i32) {
    %c0_i32 = arith.constant 0 : i32
    %c0_i32_0 = arith.constant 0 : i32
    %c0_i32_1 = arith.constant 0 : i32
    return %c0_i32, %c0_i32_0 : i32, i32
  }
  func.func @transform_6(%arg0: i32) -> (i32, i32) {
    %c0_i32 = arith.constant 0 : i32
    %c0_i32_0 = arith.constant 0 : i32
    %c0_i32_1 = arith.constant 0 : i32
    return %c0_i32, %c0_i32_0 : i32, i32
  }
  func.func @transform_7(%arg0: i32) -> (i32, i32) {
    %c0_i32 = arith.constant 0 : i32
    %c0_i32_0 = arith.constant 0 : i32
    return %arg0, %c0_i32 : i32, i32
  }
}

</mosaic_0001>

<bundles_post_ra>
// kernel: discriminator_forward.1
= control target key start
LH: loop header
LB: loop body
LE: loop exit
PB: predicated region body
PF: predicated region fallthrough
CT: control target
= control target key end

     0   :  { %v455_v0 = vmov 0.0   ;;  %vm456_vm0 = vmmov 0   ;;  %vm52_vm1 = vcmask 261120   ;;  %s590_s1 = inlined_call_operand.vmem [shape: bf16[32,128], index: 1, kind: input, shape index: {}]   ;;  %s591_s0 = inlined_call_operand.vmem [shape: f32[8,32], index: 0, kind: input, shape index: {}]   ;;  %s592_s3 = inlined_call_operand.vmem [shape: bf16[128,128], index: 3, kind: input, shape index: {}]   ;;  %s593_s5 = inlined_call_operand.vmem [shape: bf16[128,128], index: 5, kind: input, shape index: {}]   ;;  %s594_s2 = inlined_call_operand.vmem [shape: f32[1,128], index: 2, kind: input, shape index: {}]   ;;  %s595_s4 = inlined_call_operand.vmem [shape: f32[1,128], index: 4, kind: input, shape index: {}]   ;;  %s596_s6 = inlined_call_operand.vmem [shape: f32[1,128], index: 6, kind: input, shape index: {}]   ;;  %s597_s7 = inlined_call_operand.vmem [shape: bf16[8,128], index: 7, kind: output, shape index: {}]  }
   0x1   :  { %381 = vmatprep.subr.bf16.mxu0 %v455_v0  ;;  %v431_v1 = vld [vmem:[%s590_s1 + $0x8] sm:$0xff]   ;;  %385 = vmatprep.mubr.msk.bf16.mxu0 %vm456_vm0, %v455_v0  ;;  %v432_v2 = vld [vmem:[%s590_s1] sm:$0xff]   ;;  %v433_v4 = vld [vmem:[%s592_s3 + $0x38] sm:$0xff]  }
   0x2   :  { %389 = vmatprep.subr.bf16.mxu1 %v455_v0  ;;  %405 = vmatprep.mubr.msk.bf16.mxu1 %vm456_vm0, %v455_v0  ;;  %v27_v3 = vld [vmem:[%s591_s0] sm:$0xff]  ;;  %v434_v5 = vld [vmem:[%s592_s3 + $0x30] sm:$0xff]   ;;  %v435_v7 = vld [vmem:[%s592_s3 + $0x28] sm:$0xff]  }
   0x3   :  { %382 = vmatpush3.bf16.msra.mxu0 %v431_v1  ;;  %v28_v6 = vpack.c.bf16 %v27_v3, %v27_v3  ;;  %390 = vmatpush3.bf16.msra.mxu1 %v433_v4  ;;  %v436_v8 = vld [vmem:[%s592_s3 + $0x20] sm:$0xff]   ;;  %v437_v9 = vld [vmem:[%s592_s3 + $0x18] sm:$0xff]   ;;  %v438_v10 = vld [vmem:[%s592_s3 + $0x10] sm:$0xff]  }
   0x4   :  { %383 = vmatprep.subr.bf16.mxu0 %v455_v0  ;;  %391 = vmatprep.subr.bf16.mxu1 %v455_v0  ;;  %v439_v11 = vld [vmem:[%s592_s3 + $0x8] sm:$0xff]   ;;  %v440_v12 = vld [vmem:[%s592_s3] sm:$0xff]   ;;  %v441_v13 = vld [vmem:[%s593_s5 + $0x38] sm:$0xff]  }
   0x5   :  { %v442_v14 = vld [vmem:[%s593_s5 + $0x30] sm:$0xff]   ;;  %v338_v15 = vld [vmem:[%s594_s2] ss:$0 sm:$0xff]  ;;  %v443_v26 = vld [vmem:[%s593_s5 + $0x28] sm:$0xff]  }
   0x6   :  { %v444_v27 = vld [vmem:[%s593_s5 + $0x20] sm:$0xff]   ;;  %v445_v28 = vld [vmem:[%s593_s5 + $0x18] sm:$0xff]   ;;  %v446_v29 = vld [vmem:[%s593_s5 + $0x10] sm:$0xff]  }
   0x7   :  { %384 = vmatpush3.bf16.msra.mxu0 %v432_v2  ;;  %392 = vmatpush3.bf16.msra.mxu1 %v434_v5  ;;  %v447_v30 = vld [vmem:[%s593_s5 + $0x8] sm:$0xff]   ;;  %v448_v31 = vld [vmem:[%s593_s5] sm:$0xff]  }
   0x8   :  { %409 = vmatprep.subr.bf16.mxu0 %v455_v0  ;;  %393 = vmatprep.subr.bf16.mxu1 %v455_v0  ;;  %v342_v32 = vld [vmem:[%s595_s4] ss:$0 sm:$0xff] }
   0x9   :  { %v351_v43 = vld [vmem:[%s596_s6] ss:$0 sm:$0xff] }
   0xa   :  { %386 = vmatmul.mubr.msk.bf16.vlgmr.msra.gmra.mxu0 %vm52_vm1, %v28_v6 }
   0xb   :  { %425 = vmatprep.mubr.msk.bf16.mxu0 %vm456_vm0, %v455_v0  ;;  %394 = vmatpush3.bf16.msra.mxu1 %v435_v7 }
   0xc   :  { %395 = vmatprep.subr.bf16.mxu1 %v455_v0  ;;  %410 = vmatpush3.bf16.msra.mxu0 %v441_v13 }
   0xd   :  { %411 = vmatprep.subr.bf16.mxu0 %v455_v0 }
   0xf   :  { %396 = vmatpush3.bf16.msra.mxu1 %v436_v8 }
  0x10   :  { %397 = vmatprep.subr.bf16.mxu1 %v455_v0  ;;  %412 = vmatpush3.bf16.msra.mxu0 %v442_v14 }
  0x11   :  { %413 = vmatprep.subr.bf16.mxu0 %v455_v0 }
  0x13   :  { %398 = vmatpush3.bf16.msra.mxu1 %v437_v9 }
  0x14   :  { %399 = vmatprep.subr.bf16.mxu1 %v455_v0  ;;  %414 = vmatpush3.bf16.msra.mxu0 %v443_v26 }
  0x15   :  { %415 = vmatprep.subr.bf16.mxu0 %v455_v0 }
  0x17   :  { %400 = vmatpush3.bf16.msra.mxu1 %v438_v10 }
  0x18   :  { %401 = vmatprep.subr.bf16.mxu1 %v455_v0  ;;  %416 = vmatpush3.bf16.msra.mxu0 %v444_v27 }
  0x19   :  { %417 = vmatprep.subr.bf16.mxu0 %v455_v0 }
  0x1b   :  { %402 = vmatpush3.bf16.msra.mxu1 %v439_v11 }
  0x1c   :  { %403 = vmatprep.subr.bf16.mxu1 %v455_v0  ;;  %418 = vmatpush3.bf16.msra.mxu0 %v445_v28 }
  0x1d   :  { %419 = vmatprep.subr.bf16.mxu0 %v455_v0 }
  0x1f   :  { %404 = vmatpush3.bf16.msra.mxu1 %v440_v12 }
  0x20   :  { %420 = vmatpush3.bf16.msra.mxu0 %v446_v29 }
  0x21   :  { %421 = vmatprep.subr.bf16.mxu0 %v455_v0 }
  0x24   :  { %422 = vmatpush3.bf16.msra.mxu0 %v447_v30 }
  0x25   :  { %423 = vmatprep.subr.bf16.mxu0 %v455_v0 }
  0x28   :  { %424 = vmatpush3.bf16.msra.mxu0 %v448_v31 }
  0xca   :  { %v90_v16 = vpop.f32.mrf.mxu0 }
  0xcb   :  { %v91_v17 = vadd.f32 %v338_v15, %v90_v16 }
  0xcc   :  { %v387_v18 = vpop.f32.mrf.mxu0 }
  0xcd   :  { %v96_v19 = vmul.f32 0.5, %v91_v17 }
  0xce   :  { %v93_v20 = vpop.f32.mrf.mxu0 }
  0xcf   :  { %449 = vtanh.f32 %v96_v19 }
  0xd0   :  { %v388_v21 = vpop.f32.mrf.mxu0 }
  0xdc   :  { %v450_v22 = vpop.eup %449 }
  0xdd   :  { %v98_v23 = vmul.f32 0.5, %v450_v22 }
  0xdf   :  { %v99_v24 = vadd.f32 0.5, %v98_v23 }
  0xe1   :  { %v100_v25 = vpack.c.bf16 %v99_v24, %v99_v24 }
  0xe3   :  { %406 = vmatmul.mubr.bf16.vlgmr.msra.gmra.mxu1 %v100_v25 }
 0x1a3   :  { %v206_v33 = vpop.f32.mrf.mxu1 }
 0x1a4   :  { %v207_v34 = vadd.f32 %v342_v32, %v206_v33 }
 0x1a5   :  { %v407_v35 = vpop.f32.mrf.mxu1 }
 0x1a6   :  { %v212_v36 = vmul.f32 0.5, %v207_v34 }
 0x1a7   :  { %v209_v37 = vpop.f32.mrf.mxu1 }
 0x1a8   :  { %451 = vtanh.f32 %v212_v36 }
 0x1a9   :  { %v408_v38 = vpop.f32.mrf.mxu1 }
 0x1b5   :  { %v452_v39 = vpop.eup %451 }
 0x1b6   :  { %v214_v40 = vmul.f32 0.5, %v452_v39 }
 0x1b8   :  { %v215_v41 = vadd.f32 0.5, %v214_v40 }
 0x1ba   :  { %v216_v42 = vpack.c.bf16 %v215_v41, %v215_v41 }
 0x1bc   :  { %426 = vmatmul.mubr.bf16.vlgmr.msra.gmra.mxu0 %v216_v42 }
 0x27c   :  { %v322_v44 = vpop.f32.mrf.mxu0 }
 0x27d   :  { %v323_v45 = vadd.f32 %v351_v43, %v322_v44 }
 0x27e   :  { %v427_v46 = vpop.f32.mrf.mxu0 }
 0x27f   :  { %v328_v47 = vmul.f32 0.5, %v323_v45 }
 0x280   :  { %v325_v48 = vpop.f32.mrf.mxu0 }
 0x281   :  { %453 = vtanh.f32 %v328_v47 }
 0x282   :  { %v428_v49 = vpop.f32.mrf.mxu0 }
 0x28e   :  { %v454_v50 = vpop.eup %453 }
 0x28f   :  { %v330_v51 = vmul.f32 0.5, %v454_v50 }
 0x291   :  { %v331_v52 = vadd.f32 0.5, %v330_v51 }
 0x293   :  { %v332_v53 = vpack.c.bf16 %v331_v52, %v331_v52 }
 0x295   :  { %333 = vst [vmem:[%s597_s7] sm:$0xf] %v332_v53 }

</bundles_post_ra>
